<compile_context>
chip_gen: v7x
topology: tpu7x:2x2x1
jax: 0.10.0
libtpu: 0.0.40
codegen_flags: <defaults>
</compile_context>

<pallas_src>
import jax
import jax.numpy as jnp
from jax.experimental import pallas as pl
from jax.experimental.pallas import tpu as pltpu

STD_OUT = 32           # std_out of the module
MAX_TILE_PIX = 8192    # upper bound on pixels per grid step (review #1)


# ---------------------------------------------------------------------------
# Glue: bilinear resize with align_corners=True (matches F.interpolate semantics)
# ---------------------------------------------------------------------------
def _interp_matrix(n_out, n_in, dtype=jnp.float32):
    """1-D bilinear interpolation matrix (n_out, n_in), align_corners=True."""
    if n_in == 1 or n_out == 1:
        m = jnp.zeros((n_out, n_in), dtype)
        return m.at[:, 0].set(1.0)
    coords = jnp.arange(n_out, dtype=jnp.float32) * (n_in - 1) / (n_out - 1)
    lo = jnp.floor(coords).astype(jnp.int32)
    hi = jnp.minimum(lo + 1, n_in - 1)
    w_hi = coords - lo.astype(jnp.float32)
    w_lo = 1.0 - w_hi
    m = jnp.zeros((n_out, n_in), dtype)
    m = m.at[jnp.arange(n_out), lo].add(w_lo)
    m = m.at[jnp.arange(n_out), hi].add(w_hi)
    return m


def _resize_bilinear_align_corners(x_nchw, out_hw, out_dtype=None):
    H, W = out_hw
    _, _, h, w = x_nchw.shape
    if (h, w) == (H, W):
        y = x_nchw                       # identity under align_corners=True
    else:
        A = _interp_matrix(H, h)
        Bm = _interp_matrix(W, w)
        y = jnp.einsum("Hh,bchw,Ww->bcHW", A, x_nchw, Bm)
    # The optional cast fuses into the einsum epilogue -> no standalone convert pass (#5).
    return y if out_dtype is None else y.astype(out_dtype)


# ---------------------------------------------------------------------------
# Pallas kernel: channel-major 1x1 convs (matmuls) + gating + fused combination
# ---------------------------------------------------------------------------
def _make_kernel(n_feat, conv_slot, gated_sigmoid, gate_dtype):
    n_conv = sum(s is not None for s in conv_slot)

    def _gate(x):
        if gated_sigmoid:
            # One EUP transcendental (tanh) instead of exp + divide (review #2).
            return 0.5 * jnp.tanh(0.5 * x) + 0.5
        # nn.Softmax(dim=1) in NCHW == softmax over channels == axis 0 of (C, pix) tiles.
        m = jnp.max(x, axis=0, keepdims=True)
        e = jnp.exp(x - m)
        s = jnp.sum(e, axis=0, keepdims=True).astype(jnp.float32)
        return e * pl.reciprocal(s, approx=True)       # EUP vrcp, no true divide (review #2)

    def kernel(*refs):
        feat_refs = refs[:n_feat]                      # (C_i, TILE_PIX) each
        w_refs = refs[n_feat:n_feat + n_conv]          # (STD_OUT, C_i) each (conv branches)
        b_refs = refs[n_feat + n_conv:n_feat + 2 * n_conv]   # (STD_OUT, 1) each
        out_ref = refs[n_feat + 2 * n_conv]            # (STD_OUT, TILE_PIX)

        def branch(i):
            s = conv_slot[i]
            if s is None:                              # conv already applied in the wrapper
                return feat_refs[i][...].astype(jnp.float32)
            # W^T @ X : (32, C_i) @ (C_i, TILE_PIX) -> (32, TILE_PIX), f32 accumulate.
            return (jnp.dot(w_refs[s][...], feat_refs[i][...],
                            preferred_element_type=jnp.float32)
                    + b_refs[s][...])

        def gate_of(x_f32):
            # Optionally run the transcendental in bf16 (v6e/v7x only, review #3);
            # everything that accumulates stays f32.
            return _gate(x_f32.astype(gate_dtype)).astype(jnp.float32)

        # target branch
        t = branch(0)
        p_gated = gate_of(t)
        n_gated = 1.0 - p_gated
        p_target = t * (p_gated + 1.0)

        # other branches (already resized to target spatial size)
        others_sum = None
        for i in range(1, n_feat):
            o = branch(i)
            contrib = o * (gate_of(o) + 1.0)
            others_sum = contrib if others_sum is None else others_sum + contrib

        out_ref[...] = (n_gated * others_sum + p_target + t).astype(out_ref.dtype)

    return kernel


def _choose_tile_pix(HW, B, cap=MAX_TILE_PIX, min_total_steps=8, max_waste_frac=0.125):
    """Pick (tile, HW_padded).  tile is a multiple of 128 (lane width); HW_padded is a
    multiple of tile.  Preferences: (a) large tiles to amortize the ~0.35us/step overhead,
    (b) zero padding when a large divisor of H*W exists, (c) enough total grid steps that
    v7x's two TensorCores both get work and the pipeline has depth (review #1, #7)."""
    cap = max(128, (int(cap) // 128) * 128)
    hw128 = -(-HW // 128) * 128

    def occupancy_ok(t):
        return t == 128 or B * (-(-hw128 // t)) >= min_total_steps

    # 1) no-pad path: largest multiple of 128 that divides H*W (needs H*W % 128 == 0).
    best_div = 0
    if HW % 128 == 0:
        t = 128
        while t <= min(cap, HW):
            if HW % t == 0 and occupancy_ok(t):
                best_div = t
            t += 128
    if best_div >= min(1024, hw128, cap):
        return best_div, HW

    # 2) pad path: largest multiple of 128 (<= cap) with bounded padding waste.
    best_t, best_hwp = 128, hw128
    max_waste = max_waste_frac * HW + 128
    t = 128
    while t <= min(cap, hw128):
        steps = -(-hw128 // t)
        hwp = steps * t
        if (hwp - HW) <= max_waste and occupancy_ok(t):
            best_t, best_hwp = t, hwp
        t += 128

    if best_div >= best_t:            # a dividing tile of equal size avoids the pad copy
        return best_div, HW
    return best_t, best_hwp


def e_gff_pallas(target, other_targets, edge, weights, biases, *,
                 gated_method=True,
                 out_dtype=jnp.float32,
                 resized_feat_dtype=jnp.float32,
                 gate_dtype=jnp.float32,
                 max_tile_pix=MAX_TILE_PIX,
                 min_total_steps=8):
    """target: (B, t_ch, H, W); other_targets: list of (B, C_i, h_i, w_i);
    edge: (B, STD_OUT, he, we).

    weights[j]: (C_in_j, STD_OUT), biases[j]: (STD_OUT,).  NOTE: PyTorch Conv2d stores its
    1x1 weight as (C_out, C_in, 1, 1) — load as w.squeeze(-1).squeeze(-1).T to match.

    out_dtype=bfloat16          -> ~20% less total HBM traffic (review #6).
    resized_feat_dtype=bfloat16 -> halves resized-intermediate traffic; cast is fused into
                                   the resize einsum (review #5).
    gate_dtype=bfloat16         -> bf16 gate transcendentals; v6e/v7x only (review #3/#8).
    """
    B, _, H, W = target.shape
    others = list(other_targets) + [edge]             # forward() appends edge
    feats_raw = [target] + others
    n_feat = len(feats_raw)
    assert len(weights) == n_feat and len(biases) == n_feat, "unmatched weights/features"

    HW = H * W
    tile, HWp = _choose_tile_pix(HW, B, cap=max_tile_pix, min_total_steps=min_total_steps)

    feat_mats, w_list, b_list, conv_slot = [], [], [], []
    for i, f in enumerate(feats_raw):
        w = jnp.asarray(weights[i])
        b = jnp.asarray(biases[i])
        needs_resize = tuple(f.shape[2:]) != (H, W)
        if needs_resize and f.shape[1] > STD_OUT:
            # 1x1 conv commutes with bilinear resize (align_corners weights sum to 1), so
            # conv first: the full-res HBM intermediate shrinks from C_i to 32 channels
            # (review #4, wrapper-side part).
            y = jnp.einsum("bchw,co->bohw", f, w) + b.reshape(1, -1, 1, 1)
            y = _resize_bilinear_align_corners(y, (H, W), out_dtype=resized_feat_dtype)
            conv_slot.append(None)
        else:
            if needs_resize:
                y = _resize_bilinear_align_corners(f, (H, W), out_dtype=resized_feat_dtype)
            else:
                y = f     # at-size features read as-is: no standalone cast pass (review #5)
            conv_slot.append(len(w_list))
            w_list.append(w.T.astype(y.dtype))                         # (32, C_i)
            b_list.append(b.reshape(STD_OUT, 1).astype(jnp.float32))
        feat_mats.append(y.reshape(B, y.shape[1], HW))                 # free channel-major view

    pad = HWp - HW
    if pad:
        # Rare fallback (only when H*W has awkward factors); tile choice bounds the waste.
        feat_mats = [jnp.pad(m, ((0, 0), (0, 0), (0, pad))) for m in feat_mats]

    feat_specs = [pl.BlockSpec((None, m.shape[1], tile), lambda b, p: (b, 0, p))
                  for m in feat_mats]
    w_specs = [pl.BlockSpec(w.shape, lambda b, p: (0, 0)) for w in w_list]
    b_specs = [pl.BlockSpec((STD_OUT, 1), lambda b, p: (0, 0)) for _ in b_list]
    out_spec = pl.BlockSpec((None, STD_OUT, tile), lambda b, p: (b, 0, p))

    # Both grid axes are independent -> "parallel" (megacore / v7x 2-TC sharding).
    cp = dict(dimension_semantics=("parallel", "parallel"))
    vmem_est = 2 * sum(m.shape[1] * tile * jnp.dtype(m.dtype).itemsize for m in feat_mats)
    vmem_est += 2 * STD_OUT * tile * jnp.dtype(out_dtype).itemsize
    if vmem_est > 12 * 1024 * 1024:   # only if the caller pushes max_tile_pix well past 8K
        cp["vmem_limit_bytes"] = int(min(vmem_est + (8 << 20), 48 << 20))

    out = pl.pallas_call(
        _make_kernel(n_feat, conv_slot, gated_method, gate_dtype),
        out_shape=jax.ShapeDtypeStruct((B, STD_OUT, HWp), out_dtype),
        grid_spec=pltpu.PrefetchScalarGridSpec(
            num_scalar_prefetch=0,
            grid=(B, HWp // tile),
            in_specs=feat_specs + w_specs + b_specs,
            out_specs=out_spec,
        ),
        compiler_params=pltpu.CompilerParams(**cp),
    )(*feat_mats, *w_list, *b_list)

    if pad:
        out = out[:, :, :HW]
    return out.reshape(B, STD_OUT, H, W)               # already NCHW — free reshape


# ---------------------------------------------------------------------------
# Pure-JAX reference (mirrors the PyTorch forward) for correctness checking
# ---------------------------------------------------------------------------
def e_gff_ref(target, other_targets, edge, weights, biases, gated_method=True):
    def conv1x1(x, w, b):
        return jnp.einsum("bchw,co->bohw", x, w) + b.reshape(1, -1, 1, 1)

    def gate(x):
        return jax.nn.sigmoid(x) if gated_method else jax.nn.softmax(x, axis=1)

    _, _, H, W = target.shape
    t = conv1x1(target, weights[0], biases[0])
    p_gated = gate(t)
    n_gated = 1.0 - p_gated
    p_target = t * (p_gated + 1.0)
    others = list(other_targets) + [edge]
    s = jnp.zeros_like(t)
    for i, o in enumerate(others, start=1):
        oi = _resize_bilinear_align_corners(o, (H, W))
        oi = conv1x1(oi, weights[i], biases[i])
        s = s + oi * (gate(oi) + 1.0)
    return n_gated * s + p_target + t


if __name__ == "__main__":
    key = jax.random.PRNGKey(0)
    ks = jax.random.split(key, 16)

    B, H, W = 2, 16, 16
    t_ch = 4
    other_tchs = [6, 48]      # 48 > 32 exercises the conv-before-resize (commuted) path
    std_out = STD_OUT

    target = jax.random.normal(ks[0], (B, t_ch, H, W), jnp.float32)
    other1 = jax.random.normal(ks[1], (B, other_tchs[0], 8, 8), jnp.float32)
    other2 = jax.random.normal(ks[2], (B, other_tchs[1], 8, 8), jnp.float32)
    edge = jax.random.normal(ks[3], (B, std_out, H, W), jnp.float32)

    # deterministic conv parameters (1x1 conv weights stored as (C_in, C_out))
    in_chs = [t_ch] + other_tchs + [std_out]
    weights, biases = [], []
    for j, cin in enumerate(in_chs):
        weights.append(0.1 * jax.random.normal(ks[4 + 2 * j], (cin, std_out), jnp.float32))
        biases.append(0.1 * jax.random.normal(ks[5 + 2 * j], (std_out,), jnp.float32))

    ref = e_gff_ref(target, [other1, other2], edge, weights, biases, gated_method=True)

    # 1) f32 path, sigmoid gating (module default)
    out = e_gff_pallas(target, [other1, other2], edge, weights, biases, gated_method=True)
    out = jax.block_until_ready(out)
    assert out.shape == (B, std_out, H, W), out.shape
    assert jnp.allclose(out, ref, atol=1e-4, rtol=1e-4), float(jnp.max(jnp.abs(out - ref)))

    # 2) f32 path, softmax-over-channels gating (approx reciprocal -> slightly looser tol)
    ref_sm = e_gff_ref(target, [other1, other2], edge, weights, biases, gated_method=False)
    out_sm = e_gff_pallas(target, [other1, other2], edge, weights, biases,
                          gated_method=False)
    out_sm = jax.block_until_ready(out_sm)
    assert jnp.allclose(out_sm, ref_sm, atol=2e-3, rtol=2e-3), \
        float(jnp.max(jnp.abs(out_sm - ref_sm)))

    # 3) reduced-traffic mode: bf16 resized intermediates (cast fused into the resize
    #    einsum) + bf16 output.  Gate math stays f32 so this also lowers on v5e.
    out_bf = e_gff_pallas(target, [other1, other2], edge, weights, biases,
                          gated_method=True,
                          resized_feat_dtype=jnp.bfloat16, out_dtype=jnp.bfloat16)
    out_bf = jax.block_until_ready(out_bf)
    assert out_bf.dtype == jnp.bfloat16
    out_bf32 = out_bf.astype(jnp.float32)
    assert bool(jnp.all(jnp.isfinite(out_bf32)))
    assert float(jnp.max(jnp.abs(out_bf32 - ref))) < 0.25, \
        float(jnp.max(jnp.abs(out_bf32 - ref)))

    print("KERNEL_OK")
</pallas_src>

<mosaic_0001>
module attributes {stable_mosaic.version = 11 : i64} {
  func.func @kernel(%arg0: i32, %arg1: i32, %arg2: memref<1x4x128xf32, #tpu.memory_space<vmem>>, %arg3: memref<1x6x128xf32, #tpu.memory_space<vmem>>, %arg4: memref<1x32x128xf32, #tpu.memory_space<vmem>>, %arg5: memref<1x32x128xf32, #tpu.memory_space<vmem>>, %arg6: memref<32x4xf32, #tpu.memory_space<vmem>>, %arg7: memref<32x6xf32, #tpu.memory_space<vmem>>, %arg8: memref<32x32xf32, #tpu.memory_space<vmem>>, %arg9: memref<32x1xf32, #tpu.memory_space<vmem>>, %arg10: memref<32x1xf32, #tpu.memory_space<vmem>>, %arg11: memref<32x1xf32, #tpu.memory_space<vmem>>, %arg12: memref<1x32x128xf32, #tpu.memory_space<vmem>>) attributes {dimension_semantics = [#tpu.dimension_semantics<parallel>, #tpu.dimension_semantics<parallel>], iteration_bounds = array<i64: 2, 2>, scalar_prefetch = 0 : i64, scratch_operands = 0 : i64, tpu.core_type = #tpu.core_type<tc>, window_params = [{transform_indices = @transform_0, window_bounds = array<i64: 1, 4, 128>}, {transform_indices = @transform_1, window_bounds = array<i64: 1, 6, 128>}, {transform_indices = @transform_2, window_bounds = array<i64: 1, 32, 128>}, {transform_indices = @transform_3, window_bounds = array<i64: 1, 32, 128>}, {pipeline_mode = #tpu.pipeline_mode<synchronous>, transform_indices = @transform_4, window_bounds = array<i64: 32, 4>}, {pipeline_mode = #tpu.pipeline_mode<synchronous>, transform_indices = @transform_5, window_bounds = array<i64: 32, 6>}, {pipeline_mode = #tpu.pipeline_mode<synchronous>, transform_indices = @transform_6, window_bounds = array<i64: 32, 32>}, {pipeline_mode = #tpu.pipeline_mode<synchronous>, transform_indices = @transform_7, window_bounds = array<i64: 32, 1>}, {pipeline_mode = #tpu.pipeline_mode<synchronous>, transform_indices = @transform_8, window_bounds = array<i64: 32, 1>}, {pipeline_mode = #tpu.pipeline_mode<synchronous>, transform_indices = @transform_9, window_bounds = array<i64: 32, 1>}, {transform_indices = @transform_10, window_bounds = array<i64: 1, 32, 128>}]} {
    %c0 = arith.constant 0 : index
    %c0_0 = arith.constant 0 : index
    %0 = vector.load %arg6[%c0, %c0_0] : memref<32x4xf32, #tpu.memory_space<vmem>>, vector<32x4xf32>
    %c0_1 = arith.constant 0 : index
    %c0_2 = arith.constant 0 : index
    %c0_3 = arith.constant 0 : index
    %1 = vector.load %arg2[%c0_1, %c0_2, %c0_3] : memref<1x4x128xf32, #tpu.memory_space<vmem>>, vector<1x4x128xf32>
    %2 = vector.shape_cast %1 : vector<1x4x128xf32> to vector<4x128xf32>
    %cst = arith.constant dense<0.000000e+00> : vector<32x128xf32>
    %3 = tpu.matmul %0, %2, %cst {dimension_numbers = #tpu.dot_dimension_numbers<[1], [0], [0], [1], [0, 0, 1, 1], [], []>} : vector<32x4xf32>, vector<4x128xf32>, vector<32x128xf32> -> vector<32x128xf32>
    %c0_4 = arith.constant 0 : index
    %c0_5 = arith.constant 0 : index
    %4 = vector.load %arg9[%c0_4, %c0_5] : memref<32x1xf32, #tpu.memory_space<vmem>>, vector<32x1xf32>
    %5 = vector.broadcast %4 : vector<32x1xf32> to vector<32x128xf32>
    %6 = arith.addf %3, %5 : vector<32x128xf32>
    %cst_6 = arith.constant 5.000000e-01 : f32
    %7 = vector.broadcast %cst_6 : f32 to vector<32x128xf32>
    %8 = arith.mulf %7, %6 : vector<32x128xf32>
    %9 = math.tanh %8 : vector<32x128xf32>
    %cst_7 = arith.constant 5.000000e-01 : f32
    %10 = vector.broadcast %cst_7 : f32 to vector<32x128xf32>
    %11 = arith.mulf %10, %9 : vector<32x128xf32>
    %cst_8 = arith.constant 5.000000e-01 : f32
    %12 = vector.broadcast %cst_8 : f32 to vector<32x128xf32>
    %13 = arith.addf %11, %12 : vector<32x128xf32>
    %cst_9 = arith.constant 1.000000e+00 : f32
    %14 = vector.broadcast %cst_9 : f32 to vector<32x128xf32>
    %15 = arith.subf %14, %13 : vector<32x128xf32>
    %cst_10 = arith.constant 1.000000e+00 : f32
    %16 = vector.broadcast %cst_10 : f32 to vector<32x128xf32>
    %17 = arith.addf %13, %16 : vector<32x128xf32>
    %18 = arith.mulf %6, %17 : vector<32x128xf32>
    %c0_11 = arith.constant 0 : index
    %c0_12 = arith.constant 0 : index
    %19 = vector.load %arg7[%c0_11, %c0_12] : memref<32x6xf32, #tpu.memory_space<vmem>>, vector<32x6xf32>
    %c0_13 = arith.constant 0 : index
    %c0_14 = arith.constant 0 : index
    %c0_15 = arith.constant 0 : index
    %20 = vector.load %arg3[%c0_13, %c0_14, %c0_15] : memref<1x6x128xf32, #tpu.memory_space<vmem>>, vector<1x6x128xf32>
    %21 = vector.shape_cast %20 : vector<1x6x128xf32> to vector<6x128xf32>
    %cst_16 = arith.constant dense<0.000000e+00> : vector<32x128xf32>
    %22 = tpu.matmul %19, %21, %cst_16 {dimension_numbers = #tpu.dot_dimension_numbers<[1], [0], [0], [1], [0, 0, 1, 1], [], []>} : vector<32x6xf32>, vector<6x128xf32>, vector<32x128xf32> -> vector<32x128xf32>
    %c0_17 = arith.constant 0 : index
    %c0_18 = arith.constant 0 : index
    %23 = vector.load %arg10[%c0_17, %c0_18] : memref<32x1xf32, #tpu.memory_space<vmem>>, vector<32x1xf32>
    %24 = vector.broadcast %23 : vector<32x1xf32> to vector<32x128xf32>
    %25 = arith.addf %22, %24 : vector<32x128xf32>
    %cst_19 = arith.constant 5.000000e-01 : f32
    %26 = vector.broadcast %cst_19 : f32 to vector<32x128xf32>
    %27 = arith.mulf %26, %25 : vector<32x128xf32>
    %28 = math.tanh %27 : vector<32x128xf32>
    %cst_20 = arith.constant 5.000000e-01 : f32
    %29 = vector.broadcast %cst_20 : f32 to vector<32x128xf32>
    %30 = arith.mulf %29, %28 : vector<32x128xf32>
    %cst_21 = arith.constant 5.000000e-01 : f32
    %31 = vector.broadcast %cst_21 : f32 to vector<32x128xf32>
    %32 = arith.addf %30, %31 : vector<32x128xf32>
    %cst_22 = arith.constant 1.000000e+00 : f32
    %33 = vector.broadcast %cst_22 : f32 to vector<32x128xf32>
    %34 = arith.addf %32, %33 : vector<32x128xf32>
    %35 = arith.mulf %25, %34 : vector<32x128xf32>
    %c0_23 = arith.constant 0 : index
    %c0_24 = arith.constant 0 : index
    %c0_25 = arith.constant 0 : index
    %36 = vector.load %arg4[%c0_23, %c0_24, %c0_25] : memref<1x32x128xf32, #tpu.memory_space<vmem>>, vector<1x32x128xf32>
    %37 = vector.shape_cast %36 : vector<1x32x128xf32> to vector<32x128xf32>
    %cst_26 = arith.constant 5.000000e-01 : f32
    %38 = vector.broadcast %cst_26 : f32 to vector<32x128xf32>
    %39 = arith.mulf %38, %37 : vector<32x128xf32>
    %40 = math.tanh %39 : vector<32x128xf32>
    %cst_27 = arith.constant 5.000000e-01 : f32
    %41 = vector.broadcast %cst_27 : f32 to vector<32x128xf32>
    %42 = arith.mulf %41, %40 : vector<32x128xf32>
    %cst_28 = arith.constant 5.000000e-01 : f32
    %43 = vector.broadcast %cst_28 : f32 to vector<32x128xf32>
    %44 = arith.addf %42, %43 : vector<32x128xf32>
    %cst_29 = arith.constant 1.000000e+00 : f32
    %45 = vector.broadcast %cst_29 : f32 to vector<32x128xf32>
    %46 = arith.addf %44, %45 : vector<32x128xf32>
    %47 = arith.mulf %37, %46 : vector<32x128xf32>
    %48 = arith.addf %35, %47 : vector<32x128xf32>
    %c0_30 = arith.constant 0 : index
    %c0_31 = arith.constant 0 : index
    %49 = vector.load %arg8[%c0_30, %c0_31] : memref<32x32xf32, #tpu.memory_space<vmem>>, vector<32x32xf32>
    %c0_32 = arith.constant 0 : index
    %c0_33 = arith.constant 0 : index
    %c0_34 = arith.constant 0 : index
    %50 = vector.load %arg5[%c0_32, %c0_33, %c0_34] : memref<1x32x128xf32, #tpu.memory_space<vmem>>, vector<1x32x128xf32>
    %51 = vector.shape_cast %50 : vector<1x32x128xf32> to vector<32x128xf32>
    %cst_35 = arith.constant dense<0.000000e+00> : vector<32x128xf32>
    %52 = tpu.matmul %49, %51, %cst_35 {dimension_numbers = #tpu.dot_dimension_numbers<[1], [0], [0], [1], [0, 0, 1, 1], [], []>} : vector<32x32xf32>, vector<32x128xf32>, vector<32x128xf32> -> vector<32x128xf32>
    %c0_36 = arith.constant 0 : index
    %c0_37 = arith.constant 0 : index
    %53 = vector.load %arg11[%c0_36, %c0_37] : memref<32x1xf32, #tpu.memory_space<vmem>>, vector<32x1xf32>
    %54 = vector.broadcast %53 : vector<32x1xf32> to vector<32x128xf32>
    %55 = arith.addf %52, %54 : vector<32x128xf32>
    %cst_38 = arith.constant 5.000000e-01 : f32
    %56 = vector.broadcast %cst_38 : f32 to vector<32x128xf32>
    %57 = arith.mulf %56, %55 : vector<32x128xf32>
    %58 = math.tanh %57 : vector<32x128xf32>
    %cst_39 = arith.constant 5.000000e-01 : f32
    %59 = vector.broadcast %cst_39 : f32 to vector<32x128xf32>
    %60 = arith.mulf %59, %58 : vector<32x128xf32>
    %cst_40 = arith.constant 5.000000e-01 : f32
    %61 = vector.broadcast %cst_40 : f32 to vector<32x128xf32>
    %62 = arith.addf %60, %61 : vector<32x128xf32>
    %cst_41 = arith.constant 1.000000e+00 : f32
    %63 = vector.broadcast %cst_41 : f32 to vector<32x128xf32>
    %64 = arith.addf %62, %63 : vector<32x128xf32>
    %65 = arith.mulf %55, %64 : vector<32x128xf32>
    %66 = arith.addf %48, %65 : vector<32x128xf32>
    %67 = arith.mulf %15, %66 : vector<32x128xf32>
    %68 = arith.addf %67, %18 : vector<32x128xf32>
    %69 = arith.addf %68, %6 : vector<32x128xf32>
    %c0_42 = arith.constant 0 : index
    %c0_43 = arith.constant 0 : index
    %c0_44 = arith.constant 0 : index
    %70 = vector.load %arg12[%c0_42, %c0_43, %c0_44] : memref<1x32x128xf32, #tpu.memory_space<vmem>>, vector<1x32x128xf32>
    %71 = vector.shape_cast %70 : vector<1x32x128xf32> to vector<32x128xf32>
    %72 = vector.shape_cast %69 : vector<32x128xf32> to vector<1x32x128xf32>
    tpu.vector_store %arg12[%c0_42, %c0_43, %c0_44], %72 {strides = array<i32>} : memref<1x32x128xf32, #tpu.memory_space<vmem>>, vector<1x32x128xf32>,
    return
  }
  func.func @transform_0(%arg0: i32, %arg1: i32) -> (i32, i32, i32) {
    %c0_i32 = arith.constant 0 : i32
    %c0_i32_0 = arith.constant 0 : i32
    return %arg0, %c0_i32, %arg1 : i32, i32, i32
  }
  func.func @transform_1(%arg0: i32, %arg1: i32) -> (i32, i32, i32) {
    %c0_i32 = arith.constant 0 : i32
    %c0_i32_0 = arith.constant 0 : i32
    return %arg0, %c0_i32, %arg1 : i32, i32, i32
  }
  func.func @transform_2(%arg0: i32, %arg1: i32) -> (i32, i32, i32) {
    %c0_i32 = arith.constant 0 : i32
    %c0_i32_0 = arith.constant 0 : i32
    return %arg0, %c0_i32, %arg1 : i32, i32, i32
  }
  func.func @transform_3(%arg0: i32, %arg1: i32) -> (i32, i32, i32) {
    %c0_i32 = arith.constant 0 : i32
    %c0_i32_0 = arith.constant 0 : i32
    return %arg0, %c0_i32, %arg1 : i32, i32, i32
  }
  func.func @transform_4(%arg0: i32, %arg1: i32) -> (i32, i32) {
    %c0_i32 = arith.constant 0 : i32
    %c0_i32_0 = arith.constant 0 : i32
    %c0_i32_1 = arith.constant 0 : i32
    return %c0_i32, %c0_i32_0 : i32, i32
  }
  func.func @transform_5(%arg0: i32, %arg1: i32) -> (i32, i32) {
    %c0_i32 = arith.constant 0 : i32
    %c0_i32_0 = arith.constant 0 : i32
    %c0_i32_1 = arith.constant 0 : i32
    return %c0_i32, %c0_i32_0 : i32, i32
  }
  func.func @transform_6(%arg0: i32, %arg1: i32) -> (i32, i32) {
    %c0_i32 = arith.constant 0 : i32
    %c0_i32_0 = arith.constant 0 : i32
    %c0_i32_1 = arith.constant 0 : i32
    return %c0_i32, %c0_i32_0 : i32, i32
  }
  func.func @transform_7(%arg0: i32, %arg1: i32) -> (i32, i32) {
    %c0_i32 = arith.constant 0 : i32
    %c0_i32_0 = arith.constant 0 : i32
    %c0_i32_1 = arith.constant 0 : i32
    return %c0_i32, %c0_i32_0 : i32, i32
  }
  func.func @transform_8(%arg0: i32, %arg1: i32) -> (i32, i32) {
    %c0_i32 = arith.constant 0 : i32
    %c0_i32_0 = arith.constant 0 : i32
    %c0_i32_1 = arith.constant 0 : i32
    return %c0_i32, %c0_i32_0 : i32, i32
  }
  func.func @transform_9(%arg0: i32, %arg1: i32) -> (i32, i32) {
    %c0_i32 = arith.constant 0 : i32
    %c0_i32_0 = arith.constant 0 : i32
    %c0_i32_1 = arith.constant 0 : i32
    return %c0_i32, %c0_i32_0 : i32, i32
  }
  func.func @transform_10(%arg0: i32, %arg1: i32) -> (i32, i32, i32) {
    %c0_i32 = arith.constant 0 : i32
    %c0_i32_0 = arith.constant 0 : i32
    return %arg0, %c0_i32, %arg1 : i32, i32, i32
  }
}

</mosaic_0001>

<bundles_post_ra>
// kernel: tpu_custom_call.1
= control target key start
LH: loop header
LB: loop body
LE: loop exit
PB: predicated region body
PF: predicated region fallthrough
CT: control target
= control target key end

     0   :  { %s1981_s0 = inlined_call_operand.vmem [shape: f32[2,4,256], index: 0, kind: input, shape index: {}]   ;;  %s1982_s1 = inlined_call_operand.vmem [shape: f32[2,6,256], index: 1, kind: input, shape index: {}]   ;;  %s1983_s2 = inlined_call_operand.vmem [shape: f32[2,32,256], index: 2, kind: input, shape index: {}]   ;;  %s1984_s3 = inlined_call_operand.hbm [shape: f32[2,32,256], index: 3, kind: input, shape index: {}]   ;;  %s1985_s4 = inlined_call_operand.vmem [shape: f32[32,4], index: 4, kind: input, shape index: {}]   ;;  %s1986_s5 = inlined_call_operand.vmem [shape: f32[32,6], index: 5, kind: input, shape index: {}]   ;;  %s1987_s6 = inlined_call_operand.vmem [shape: f32[32,32], index: 6, kind: input, shape index: {}]   ;;  %s1988_s7 = inlined_call_operand.vmem [shape: f32[32,1], index: 7, kind: input, shape index: {}]   ;;  %s1989_s8 = inlined_call_operand.vmem [shape: f32[32,1], index: 8, kind: input, shape index: {}]   ;;  %s1990_s9 = inlined_call_operand.vmem [shape: f32[32,1], index: 9, kind: input, shape index: {}]   ;;  %s1991_s10 = inlined_call_operand.hbm [shape: f32[2,32,256], index: 10, kind: output, shape index: {}]  }
   0x1   :  { %2002 = sst [smem:[#allocation18_spill]] %s1983_s2 }
   0x2   :  { %2003 = sst [smem:[#allocation19_spill]] %s1984_s3 }
   0x3   :  { %2004 = sst [smem:[#allocation20_spill]] %s1991_s10 }
   0x4   :  { %15 = vsyncpa [#allocation4], 0 }
   0x5   :  { %17 = vsyncpa [#allocation4 + $0x1], 0 }
   0x6   :  { %18 = vsyncpa [#allocation5], 0 }
   0x7   :  { %20 = vsyncpa [#allocation5 + $0x1], 0  ;;  %s1609_s13 = smov 0   ;;  %s1611_s14 = smov 0  }
   0x8   :  { %s1613_s15 = smov 0   ;;  %s1615_s16 = smov 0  }
   0x9   :  { %s1617_s17 = smov 0   ;;  %s1619_s18 = smov 0  }
   0xa   :  { %s1621_s19 = smov 0   ;;  %s1623_s20 = smov 0  }
   0xb LB: > { %2005 = sst [smem:[#allocation9_spill]] %s1515_s13  ;;  %s1206_s21 = sadd.s32 4294967295, %s1543_s20   ;;  %s1543_s20 = sphi %s1623_s20, %s26_s20   ;;  %s1539_s19 = sphi %s1621_s19, %s2031_s19   ;;  %s1535_s18 = sphi %s1619_s18, %s2030_s18   ;;  %s1531_s17 = sphi %s1617_s17, %s2029_s17   ;;  %s1527_s16 = sphi %s1615_s16, %s2028_s16   ;;  %s1523_s15 = sphi %s1613_s15, %s2027_s15   ;;  %s1519_s14 = sphi %s1611_s14, %s2026_s14   ;;  %s1515_s13 = sphi %s1609_s13, %s2025_s13  }
   0xc   : > { %2006 = sst [smem:[#allocation10_spill]] %s1519_s14  ;;  %s1207_s22 = sadd.s32 4294967294, %s1543_s20  }
   0xd   : > { %2007 = sst [smem:[#allocation11_spill]] %s1523_s15  ;;  %s35_s23 = sadd.s32 1, %s1535_s18 }
   0xe   : > { %2008 = sst [smem:[#allocation12_spill]] %s1535_s18  ;;  %p36_p0 = scmp.ge.s32.totalorder %s35_s23, 2 }
   0xf   : > { %2009 = sst [smem:[#allocation13_spill]] %s1539_s19  ;;  %s38_s24 = sadd.s32 1, %s1539_s19 }
  0x10   : > { %p110_p1 = scmp.ne.s32.totalorder %s1523_s15, %s1519_s14  ;;  %p111_p2 = scmp.eq.s32.totalorder %s1543_s20, 0 }
  0x11   : > { %s2033_s23 = smov (%p36_p0, %s35_s23), 0  ;;  %s2035_s24 = smov (!%p36_p0, %s38_s24), %s1539_s19 }
  0x12   : > { %2010 = sst [smem:[#allocation14_spill]] %s2033_s23  ;;  %s99_s25 = ssub.s32 %s1535_s18, %s2033_s23 }
  0x13   : > { %p1661_p3 = por %p111_p2, %p110_p1  ;;  %p40_p4 = scmp.ge.s32.totalorder %s2035_s24, 2 }
  0x14   : > { %p144_p5 = scmp.ne.s32.totalorder %s1519_s14, %s1515_s13  ;;  %p145_p6 = scmp.eq.s32.totalorder %s1206_s21, 0 }
  0x15   : > { %p296_p7 = scmp.eq.s32.totalorder %s1206_s21, 3  ;;  %s2037_s24 = smov (%p40_p4, %s2035_s24), 0 }
  0x16   : > { %2012 = sst [smem:[#allocation15_spill]] %s2037_s24  ;;  %p1669_p8 = por %p145_p6, %p144_p5 }
  0x17   : > { %p1673_p9 = por %p296_p7, %p110_p1  ;;  %s98_s29 = ssub.s32 %s1539_s19, %s2037_s24 }
  0x18   : > { %p302_p10 = scmp.eq.s32.totalorder %s1207_s22, 3  ;;  %s100_s30 = sor.u32 %s99_s25, %s98_s29 }
  0x19   : > { %s2014_s28 = scalar_select %p1673_p9, 1, 0 }
  0x1a   : > { %s103_s11 = sadd.s32 1, %s1523_s15  ;;  %p101_p11 = scmp.eq.s32.totalorder %s100_s30, 0 }
  0x1b   : > { %p1680_p12 = por %p302_p10, %p144_p5  ;;  %p1209_p13 = scmp.ge.s32.totalorder %s1543_s20, 4 }
  0x1c   : > { %s1685_s21 = scalar_select %p101_p11, %s1523_s15, %s103_s11  }
  0x1d   : > { %s2015_s12 = scalar_select %p1680_p12, 1, 0 }
  0x1e   : > { %2017 = sst [smem:[#allocation17_spill]] %s1685_s21  ;;  %336 = sbr.rel (%p1209_p13) target bundleno = 82 (0x52), region = 40 }
  0x1f   : > { %2016 = sst [smem:[#allocation16_spill]] %s2015_s12 }
  0x25   : > { %361 = sbr.rel (!%p1661_p3) target bundleno = 49 (0x31), region = 52  ;;  %s363_s24 = sand.u32 (%p1661_p3), 1, %s1523_s15  }
  0x26   : > { %s1211_s22 = sshll.u32 (%p1661_p3), %s1539_s19, 3  ;;  %s1210_s25 = sshll.u32 (%p1661_p3), %s363_s24, 5 }
  0x27   : > { %s367_s29 = sadd.s32 (%p1661_p3), %s1535_s18, %s1211_s22  ;;  %s2018_s2 = sld [smem:[#allocation18_spill]] (%p1661_p3) }
  0x28   : > { %s1212_s30 = sshll.u32 (%p1661_p3), %s367_s29, 3  ;;  %s365_s11 = scalar_lea.vmem (%p1661_p3), [#allocation2], %s1210_s25 }
  0x2d   : > { %s369_s12 = scalar_lea.vmem %s2018_s2, %s1212_s30 }
  0x2e   : > { %v403_v0 = vld [vmem:[%s369_s12] sm:$0xff]  ;;  %v405_v1 = vld [vmem:[%s369_s12 + $0x10] sm:$0xff] }
  0x2f   : > { %v407_v2 = vld [vmem:[%s369_s12 + $0x20] sm:$0xff]  ;;  %404 = vst [vmem:[%s365_s11] sm:$0xff] %v403_v0  ;;  %406 = vst [vmem:[%s365_s11 + $0x8] sm:$0xff] %v405_v1  ;;  %v409_v3 = vld [vmem:[%s369_s12 + $0x30] sm:$0xff] }
  0x30   : > { %408 = vst [vmem:[%s365_s11 + $0x10] sm:$0xff] %v407_v2  ;;  %410 = vst [vmem:[%s365_s11 + $0x18] sm:$0xff] %v409_v3 }
  0x31 PF: > { %s417_s24 = sand.u32 1, %s1523_s15   ;;  %s1214_s22 = sshll.u32 %s1539_s19, 3 }
  0x32   : > { %s1213_s29 = sshll.u32 %s417_s24, 5  ;;  %s426_s21 = sadd.s32 %s1535_s18, %s1214_s22 }
  0x33   : > { %s1215_s13 = sshll.u32 %s426_s21, 7  ;;  %s421_s23 = scalar_lea.vmem [#allocation3], %s1213_s29 }
  0x34   : > { %s429_s30 = sshll.u32 %s421_s23, 4  ;;  %s2019_s3 = sld [smem:[#allocation19_spill]]  ;;  %s1704_s30 = int_to_ptr.vmem [resolvable:$true] %s429_s30 }
  0x35   : > { %s1706_s12 = scalar_lea.sflag [#allocation4], %s417_s24 }
  0x3a   : > { %s1702_s25 = scalar_lea.hbm %s2019_s3, %s1215_s13  ;;  %s1421_s29 = scalar_lea.hbm %s2019_s3, 2048 }
  0x3b   : > { %s1417_s11 = scalar_lea.hbm %s1702_s25, 512  ;;  %p1422_p4 = scmp.lt.u32.totalorder %s1702_s25, %s2019_s3 }
  0x3c   : > { %p1418_p0 = scmp.ne.s32.totalorder %s1702_s25, %s1417_s11  ;;  %p1423_p5 = scmp.lt.u32.totalorder %s1421_s29, %s1417_s11 }
  0x3d   : > { %p1425_p7 = scmp.lt.u32.totalorder %s1417_s11, %s1702_s25 }
  0x3e   : > { %p1419_p1 = pnand %p1418_p0, %p1661_p3  ;;  %p1424_p6 = por %p1423_p5, %p1422_p4 }
  0x40   : > { %p1420_p2 = pneg %p1419_p1  ;;  %p1426_p10 = por %p1425_p7, %p1424_p6 }
  0x42   : > { %p1427_p11 = pnand %p1426_p10, %p1420_p2 }
  0x44   : > { %1430 = shalt.err (!%p1427_p11)
}
  0x45   : > { %s1431_s24 = scalar_lea.vmem %s1704_s30, 512  ;;  %s1545_s13 = smov [#allocation3]  }
  0x46   : > { %p1432_p13 = scmp.ne.s32.totalorder %s1704_s30, %s1431_s24  ;;  %s1435_s23 = sshll.u32 %s1545_s13, 4  ;;  %s1436_s23 = int_to_ptr.vmem [resolvable:$false] %s1435_s23 }
  0x47   : > { %s1437_s21 = scalar_lea.vmem %s1436_s23, 1024  ;;  %p1438_p12 = scmp.lt.s32.totalorder %s1704_s30, %s1436_s23 }
  0x48   : > { %p1433_p0 = pnand %p1432_p13, %p1661_p3  ;;  %p1439_p9 = scmp.lt.s32.totalorder %s1437_s21, %s1431_s24 }
  0x4a   : > { %p1434_p1 = pneg %p1433_p0  ;;  %p1440_p4 = por %p1439_p9, %p1438_p12 }
  0x4c   : > { %p1441_p5 = pnand %p1440_p4, %p1434_p1 }
  0x4e   : > { %1444 = shalt.err (!%p1441_p5)
}
  0x4f   : > { %s1546_s11 = smov 256   ;;  %s1547_s22 = smov 128  }
  0x50   : > { %s1548_s29 = smov 8  }
  0x51   : > { %1303 = dma.hbm_to_vmem [thread:$0]  (%p1661_p3), %s1702_s25, 512, %s1704_s30, %s1706_s12, %s1546_s11, %s1547_s22, %s1548_s29  }
  0x52 PF: > { %p1216_p2 = scmp.ge.s32.totalorder %s1543_s20, 1  ;;  %p437_p6 = scmp.lt.s32.totalorder %s1543_s20, 5 }
  0x54   : > { %p438_p7 = pnand %p1216_p2, %p437_p6 }
  0x55   : > { %s1733_s2 = sand.u32 (!%p438_p7), 1, %s1519_s14  }
  0x56   : > { %441 = sbr.rel (%p438_p7) target bundleno = 376 (0x178), region = 94  ;;  %s1736_s10 = sshll.u32 (!%p438_p7), %s1733_s2, 5 }
  0x57   : > { %s1739_s24 = scalar_lea.vmem (!%p438_p7), [#allocation2], %s1736_s10  ;;  %s451_s26 = scalar_lea.sflag (!%p438_p7), [#allocation4], %s1733_s2 }
  0x58   : > { %s1743_s30 = scalar_lea.vmem (!%p438_p7), [#allocation3], %s1736_s10 }
  0x5d   : > { %1506 = dma.done.wait (%p1669_p8), %s451_s26, 512  }
  0x5e   : > { %1508 = vsyncadd (%p1669_p8), %s451_s26, 4294966784  ;;  %p511_p3 = scmp.lt.s32.totalorder %s1531_s17, 1  ;;  %p513_p9 = scmp.lt.s32.totalorder %s1527_s16, 1  ;;  %v1549_v4 = vmov 0   ;;  %vm556_vm0 = vcmask 31744   ;;  %vm715_vm1 = vcmask 48128  }
  0x5f   : > { %1384 = vset.pattern.permute.xlu1 %v1549_v4  ;;  %1383 = vset.pattern.permute.xlu0 %v1549_v4  ;;  %vm569_vm2 = vcmask 1043456   ;;  %vm728_vm3 = vcmask 1045504   ;;  %v527_v5 = vld [vmem:[%s1985_s4] sm:$0xff]  ;;  %v528_v7 = vld [vmem:[%s1985_s4 + $0x8] sm:$0xff]  ;;  %v529_v14 = vld [vmem:[%s1985_s4 + $0x10] sm:$0xff]  ;;  %vm905_vm4 = vcmask 261120  }
  0x60   : > { %s512_s25 = scalar_select %p511_p3, %s1531_s17, 1  ;;  %v686_v6 = vld [vmem:[%s1986_s5] sm:$0xff]  ;;  %1263 = vmatprep.mubr.msk.f32.mxu0 %vm556_vm0, %v527_v5  ;;  %v687_v10 = vld [vmem:[%s1986_s5 + $0x8] sm:$0xff]  ;;  %v688_v15 = vld [vmem:[%s1986_s5 + $0x10] sm:$0xff] }
  0x61   : > { %s514_s12 = scalar_select %p513_p9, %s1527_s16, 1  ;;  %1271 = vmatprep.mubr.msk.f32.mxu1 %vm715_vm1, %v686_v6  ;;  %v877_v11 = vld [vmem:[%s1743_s30] sm:$0xff]  ;;  %v878_v12 = vld [vmem:[%s1743_s30 + $0x8] sm:$0xff]  ;;  %v879_v16 = vld [vmem:[%s1743_s30 + $0x10] sm:$0xff] }
  0x62   : > { %s1220_s13 = sshll.u32 %s512_s25, 1  ;;  %v1291_v13 = vpack.c.bf16 %v878_v12, %v877_v11  ;;  %v880_v17 = vld [vmem:[%s1743_s30 + $0x18] sm:$0xff]  ;;  %v873_v21 = vld [vmem:[%s1987_s6] sm:$0xff]  ;;  %v875_v22 = vld [vmem:[%s1987_s6 + $0x10] sm:$0xff]  ;;  %s2020_s25 = sld [smem:[#allocation20_spill]] }
  0x63   : > { %s516_s23 = sadd.s32 %s1220_s13, %s514_s12  ;;  %v530_v18 = vld [vmem:[%s1985_s4 + $0x18] sm:$0xff]  ;;  %v1295_v20 = vpack.c.bf16 %v880_v17, %v879_v16  ;;  %v693_v23 = vld [vmem:[%s1989_s8 + $0x10] sm:$0xff]  ;;  %v691_v24 = vld [vmem:[%s1989_s8] sm:$0xff]  ;;  %s1048_s13 = scalar_lea.sflag [#allocation5], %s1733_s2 }
  0x64   : > { %s1221_s21 = sshll.u32 %s516_s23, 2  ;;  %s1223_s27 = sshll.u32 %s516_s23, 3  ;;  %v689_v19 = vld [vmem:[%s1986_s5 + $0x18] sm:$0xff]  ;;  %v874_v25 = vld [vmem:[%s1987_s6 + $0x8] sm:$0xff]  ;;  %707 = vperm.xlu1 %1384, %v693_v23   ;;  %697 = vperm.xlu0 %1383, %v691_v24   ;;  %v881_v30 = vld [vmem:[%s1990_s9] sm:$0xff] }
  0x65   : > { %s518_s29 = scalar_lea.vmem %s1981_s0, %s1221_s21  ;;  %s526_s19 = scalar_lea.vmem %s1982_s1, %s1223_s27  ;;  %v876_v26 = vld [vmem:[%s1987_s6 + $0x18] sm:$0xff]  ;;  %v692_v28 = vld [vmem:[%s1989_s8 + $0x8] sm:$0xff]  ;;  %v883_v32 = vld [vmem:[%s1990_s9 + $0x10] sm:$0xff] }
  0x66   : > { %v531_v8 = vld [vmem:[%s518_s29] sm:$0xf]  ;;  %v694_v27 = vld [vmem:[%s1989_s8 + $0x18] sm:$0xff]  ;;  %v882_v29 = vld [vmem:[%s1990_s9 + $0x8] sm:$0xff]  ;;  %p2021_p12 = scmp.ne.s32.totalorder %s2014_s28, 0  ;;  %s1550_s23 = smov [#allocation6]  }
  0x67   : > { %v690_v9 = vld [vmem:[%s526_s19] sm:$0x3f]  ;;  %1261 = vmatprep.subr.msk.mxu0 %vm569_vm2, %v531_v8  ;;  %v884_v31 = vld [vmem:[%s1990_s9 + $0x18] sm:$0xff]  ;;  %v533_v33 = vld [vmem:[%s1988_s7 + $0x8] sm:$0xff]  ;;  %s1449_s14 = sshll.u32 %s1550_s23, 4  ;;  %s1450_s14 = int_to_ptr.vmem [resolvable:$false] %s1449_s14 }
  0x68   : > { %1269 = vmatprep.subr.msk.mxu1 %vm728_vm3, %v690_v9  ;;  %1262 = vmatpush3.msk.msra.mxu0 %vm569_vm2, %v531_v8  ;;  %v532_v34 = vld [vmem:[%s1988_s7] sm:$0xff]  ;;  %v535_v35 = vld [vmem:[%s1988_s7 + $0x18] sm:$0xff]  ;;  %v534_v36 = vld [vmem:[%s1988_s7 + $0x10] sm:$0xff]  ;;  %s1451_s15 = scalar_lea.vmem %s1450_s14, 1024 }
  0x69   : > { %1270 = vmatpush3.msk.msra.mxu1 %vm728_vm3, %v690_v9  ;;  %1264 = vmatmul.mubr.msk.f32.vlgmr.msra.gmra.mrb[0].mxu0 %vm556_vm0, %v528_v7  ;;  %v1848_v43 = vld [vmem:[%s1739_s24 + $0x8] sm:$0xff]  ;;  %v1851_v46 = vld [vmem:[%s1739_s24] sm:$0xff]  ;;  %v1854_v47 = vld [vmem:[%s1739_s24 + $0x18] sm:$0xff] }
  0x6a   : > { %1272 = vmatmul.mubr.msk.f32.vlgmr.msra.gmra.mrb[0].mxu1 %vm715_vm1, %v687_v10  ;;  %1292 = vmatprep.subr.bf16.mxu0 %v1291_v13  ;;  %v846_v48 = vmul.f32 0.5, %v1848_v43  ;;  %v845_v49 = vmul.f32 0.5, %v1851_v46  ;;  %v1859_v50 = vld [vmem:[%s1739_s24 + $0x10] sm:$0xff]  ;;  %v848_v51 = vmul.f32 0.5, %v1854_v47  ;;  %s1239_s24 = sshll.u32 %s1531_s17, 3  ;;  %s510_s17 = scalar_lea.vmem [#allocation6], %s1736_s10 }
  0x6b   : > { %1299 = vmatprep.subr.bf16.mxu1 %v1291_v13  ;;  %1294 = vmatpush3.bf16.msra.mxu0 %v1291_v13  ;;  %v847_v54 = vmul.f32 0.5, %v1859_v50  ;;  %s1059_s30 = sadd.s32 %s1527_s16, %s1239_s24  ;;  %s1062_s29 = sshll.u32 %s510_s17, 4  ;;  %s1920_s29 = int_to_ptr.vmem [resolvable:$true] %s1062_s29 }
  0x6c   : > { %1301 = vmatpush3.bf16.msra.mxu1 %v1291_v13  ;;  %1266 = vmatprep.mubr.msk.f32.mxu0 %vm556_vm0, %v529_v14  ;;  %1385 = vtanh.f32 %v846_v48  ;;  %s1240_s26 = sshll.u32 %s1059_s30, 7  ;;  %s1445_s3 = scalar_lea.vmem %s1920_s29, 512 }
  0x6d   : > { %1274 = vmatprep.mubr.msk.f32.mxu1 %vm715_vm1, %v688_v15  ;;  %1267 = vmatmul.mubr.msk.f32.gmra.mrb[2].mxu0 %vm556_vm0, %v530_v18  ;;  %1387 = vtanh.f32 %v845_v49  ;;  %s1926_s12 = scalar_lea.hbm %s2020_s25, %s1240_s26  ;;  %p1446_p8 = scmp.ne.s32.totalorder %s1920_s29, %s1445_s3 }
  0x6e   : > { %1275 = vmatmul.mubr.msk.f32.gmra.mrb[2].mxu1 %vm715_vm1, %v689_v19  ;;  %1296 = vmatprep.subr.bf16.mxu0 %v1295_v20  ;;  %1389 = vtanh.f32 %v848_v51  ;;  %p1452_p13 = scmp.lt.s32.totalorder %s1920_s29, %s1450_s14  ;;  %p1453_p0 = scmp.lt.s32.totalorder %s1451_s15, %s1445_s3 }
  0x6f   : > { %1300 = vmatprep.subr.bf16.mxu1 %v1295_v20  ;;  %1298 = vmatpush3.bf16.msra.mxu0 %v1295_v20  ;;  %1391 = vtanh.f32 %v847_v54  ;;  %p1447_p10 = pnand %p1446_p8, %p2021_p12 }
  0x70   : > { %1302 = vmatpush3.bf16.msra.mxu1 %v1295_v20  ;;  %1285 = vmatprep.mubr.msk.f32.mxu0 %vm905_vm4, %v873_v21  ;;  %p1454_p1 = por %p1453_p0, %p1452_p13 }
  0x71   : > { %1288 = vmatprep.mubr.msk.f32.mxu1 %vm905_vm4, %v875_v22  ;;  %712 = vperm.xlu1 %1384, %v694_v27   ;;  %p1448_p11 = pneg %p1447_p10 }
  0x72   : > { %1286 = vmatmul.mubr.msk.f32.vlgmr.msra.gmra.mrb[4].mxu0 %vm905_vm4, %v874_v25  ;;  %702 = vperm.xlu0 %1383, %v692_v28  }
  0x73   : > { %1289 = vmatmul.mubr.msk.f32.vlgmr.msra.gmra.mrb[4].mxu1 %vm905_vm4, %v876_v26  ;;  %p1455_p4 = pnand %p1454_p1, %p1448_p11 }
  0x75   : > { %892 = vperm.xlu1 %1384, %v882_v29  }
  0x76   : > { %887 = vperm.xlu0 %1383, %v881_v30   ;;  %v1386_v12 = vpop.eup %1385 }
  0x77   : > { %v1388_v16 = vpop.eup %1387  ;;  %v854_v22 = vmul.f32 0.5, %v1386_v12 }
  0x78   : > { %v1390_v18 = vpop.eup %1389  ;;  %v853_v28 = vmul.f32 0.5, %v1388_v16 }
  0x79   : > { %902 = vperm.xlu1 %1384, %v884_v31   ;;  %v1392_v27 = vpop.eup %1391  ;;  %v856_v31 = vmul.f32 0.5, %v1390_v18 }
  0x7a   : > { %897 = vperm.xlu0 %1383, %v883_v32  }
  0x7d   : > { %543 = vperm.xlu1 %1384, %v533_v33  }
  0x7e   : > { %538 = vperm.xlu0 %1383, %v532_v34  }
  0x81   : > { %553 = vperm.xlu1 %1384, %v535_v35  }
  0x82   : > { %548 = vperm.xlu0 %1383, %v534_v36   ;;  %v855_v36 = vmul.f32 0.5, %v1392_v27 }
  0xe3   : > { %v708_v37 = vpop.permute.xlu1 %707  ;;  %v698_v38 = vpop.permute.xlu0 %697 }
  0xf0   : > { %v713_v39 = vpop.permute.xlu1 %712 }
  0xf1   : > { %v703_v40 = vpop.permute.xlu0 %702 }
  0xf4   : > { %v893_v41 = vpop.permute.xlu1 %892 }
  0xf5   : > { %v888_v42 = vpop.permute.xlu0 %887 }
  0xf8   : > { %v903_v44 = vpop.permute.xlu1 %902 }
  0xf9   : > { %v898_v45 = vpop.permute.xlu0 %897 }
  0xfc   : > { %v544_v52 = vpop.permute.xlu1 %543 }
  0xfd   : > { %v539_v53 = vpop.permute.xlu0 %538 }
 0x100   : > { %v554_v62 = vpop.permute.xlu1 %553 }
 0x101   : > { %v549_v63 = vpop.permute.xlu0 %548 }
 0x13c   : > { %v1265_v55 = vpop.f32.mrb[0].mxu0 }
 0x13d   : > { %v1273_v56 = vpop.f32.mrb[0].mxu1  ;;  %v1863_v57 = vadd.f32 %v1265_v55, %v544_v52  ;;  %v639_v59 = vpop.f32.mrb[1].mxu0 }
 0x13e   : > { %v1865_v58 = vadd.f32 %v1273_v56, %v703_v40  ;;  %v798_v60 = vpop.f32.mrb[1].mxu1  ;;  %v1871_v2 = vadd.f32 %v639_v59, %v539_v53  ;;  %v857_v40 = vadd.f32 0.5, %v853_v28 }
 0x13f   : > { %v1867_v61 = vadd.f32 %v798_v60, %v698_v38  ;;  %v659_v0 = vmul.f32 0.5, %v1863_v57 }
 0x140   : > { %v818_v1 = vmul.f32 0.5, %v1865_v58  ;;  %v1268_v4 = vpop.f32.mrb[2].mxu0  ;;  %v658_v13 = vmul.f32 0.5, %v1871_v2  ;;  %v861_v55 = vadd.f32 1.0, %v857_v40 }
 0x141   : > { %v817_v3 = vmul.f32 0.5, %v1867_v61  ;;  %v1276_v5 = vpop.f32.mrb[2].mxu1  ;;  %1393 = vtanh.f32 %v659_v0  ;;  %v1874_v6 = vadd.f32 %v1268_v4, %v554_v62  ;;  %v649_v8 = vpop.f32.mrb[3].mxu0 }
 0x142   : > { %v1876_v7 = vadd.f32 %v1276_v5, %v713_v39  ;;  %v808_v9 = vpop.f32.mrb[3].mxu1  ;;  %1395 = vtanh.f32 %v818_v1  ;;  %v1878_v10 = vadd.f32 %v649_v8, %v549_v63  ;;  %v858_v39 = vadd.f32 0.5, %v854_v22 }
 0x143   : > { %v1880_v11 = vadd.f32 %v808_v9, %v708_v37  ;;  %v661_v14 = vmul.f32 0.5, %v1874_v6  ;;  %1397 = vtanh.f32 %v817_v3 }
 0x144   : > { %v820_v15 = vmul.f32 0.5, %v1876_v7  ;;  %v660_v19 = vmul.f32 0.5, %v1878_v10  ;;  %v862_v54 = vadd.f32 1.0, %v858_v39 }
 0x145   : > { %v819_v17 = vmul.f32 0.5, %v1880_v11  ;;  %1399 = vtanh.f32 %v661_v14  ;;  %v1287_v20 = vpop.f32.mrb[4].mxu0  ;;  %v865_v14 = vmul.f32 %v861_v55, %v1851_v46 }
 0x146   : > { %v1290_v21 = vpop.f32.mrb[4].mxu1  ;;  %1401 = vtanh.f32 %v820_v15  ;;  %v1887_v23 = vadd.f32 %v1287_v20, %v893_v41  ;;  %v984_v25 = vpop.f32.mrb[5].mxu0  ;;  %v860_v41 = vadd.f32 0.5, %v856_v31 }
 0x147   : > { %v1889_v24 = vadd.f32 %v1290_v21, %v903_v44  ;;  %v994_v26 = vpop.f32.mrb[5].mxu1  ;;  %1403 = vtanh.f32 %v658_v13  ;;  %v1891_v29 = vadd.f32 %v984_v25, %v888_v42  ;;  %v866_v13 = vmul.f32 %v862_v54, %v1848_v43 }
 0x148   : > { %v1893_v30 = vadd.f32 %v994_v26, %v898_v45  ;;  %1405 = vtanh.f32 %v819_v17  ;;  %v1004_v32 = vmul.f32 0.5, %v1887_v23  ;;  %v859_v45 = vadd.f32 0.5, %v855_v36 }
 0x149   : > { %v1006_v33 = vmul.f32 0.5, %v1889_v24  ;;  %1407 = vtanh.f32 %v660_v19  ;;  %v1003_v34 = vmul.f32 0.5, %v1891_v29  ;;  %v864_v56 = vadd.f32 1.0, %v860_v41 }
 0x14a   : > { %v1005_v35 = vmul.f32 0.5, %v1893_v30  ;;  %1409 = vtanh.f32 %v1004_v32  ;;  %v863_v1 = vadd.f32 1.0, %v859_v45 }
 0x14b   : > { %v1394_v37 = vpop.eup %1393  ;;  %1411 = vtanh.f32 %v1006_v33  ;;  %v868_v15 = vmul.f32 %v864_v56, %v1854_v47 }
 0x14c   : > { %v1396_v38 = vpop.eup %1395  ;;  %1413 = vtanh.f32 %v1003_v34  ;;  %v667_v49 = vmul.f32 0.5, %v1394_v37  ;;  %v867_v25 = vmul.f32 %v863_v1, %v1859_v50 }
 0x14d   : > { %v826_v42 = vmul.f32 0.5, %v1396_v38  ;;  %1415 = vtanh.f32 %v1005_v35  ;;  %v1398_v44 = vpop.eup %1397 }
 0x14e   : > { %v825_v52 = vmul.f32 0.5, %v1398_v44  ;;  %v671_v4 = vadd.f32 0.5, %v667_v49 }
 0x14f   : > { %v1400_v48 = vpop.eup %1399  ;;  %v830_v51 = vadd.f32 0.5, %v826_v42 }
 0x150   : > { %v1402_v53 = vpop.eup %1401  ;;  %v669_v60 = vmul.f32 0.5, %v1400_v48  ;;  %v829_v0 = vadd.f32 0.5, %v825_v52  ;;  %v679_v31 = vadd.f32 1.0, %v671_v4  ;;  %v675_v38 = vsub.f32 1.0, %v671_v4 }
 0x151   : > { %v1404_v59 = vpop.eup %1403  ;;  %v828_v62 = vmul.f32 0.5, %v1402_v53  ;;  %v834_v5 = vadd.f32 1.0, %v830_v51 }
 0x152   : > { %v1406_v63 = vpop.eup %1405  ;;  %v666_v17 = vmul.f32 0.5, %v1404_v59  ;;  %v673_v18 = vadd.f32 0.5, %v669_v60  ;;  %v833_v22 = vadd.f32 1.0, %v829_v0  ;;  %v683_v53 = vmul.f32 %v679_v31, %v1863_v57 }
 0x153   : > { %v1408_v3 = vpop.eup %1407  ;;  %v832_v8 = vadd.f32 0.5, %v828_v62  ;;  %v827_v9 = vmul.f32 0.5, %v1406_v63  ;;  %v838_v32 = vmul.f32 %v834_v5, %v1865_v58 }
 0x154   : > { %v1410_v12 = vpop.eup %1409  ;;  %v668_v43 = vmul.f32 0.5, %v1408_v3  ;;  %v670_v36 = vadd.f32 0.5, %v666_v17  ;;  %v681_v37 = vadd.f32 1.0, %v673_v18  ;;  %v837_v40 = vmul.f32 %v833_v22, %v1867_v61 }
 0x155   : > { %v1412_v16 = vpop.eup %1411  ;;  %v836_v19 = vadd.f32 1.0, %v832_v8  ;;  %v831_v20 = vadd.f32 0.5, %v827_v9  ;;  %v1012_v26 = vmul.f32 0.5, %v1410_v12  ;;  %v870_v44 = vadd.f32 %v866_v13, %v838_v32 }
 0x156   : > { %v1414_v21 = vpop.eup %1413  ;;  %v1014_v27 = vmul.f32 0.5, %v1412_v16  ;;  %v672_v45 = vadd.f32 0.5, %v668_v43  ;;  %v678_v54 = vadd.f32 1.0, %v670_v36  ;;  %v677_v61 = vsub.f32 1.0, %v673_v18 }
 0x157   : > { %v1416_v28 = vpop.eup %1415  ;;  %v835_v33 = vadd.f32 1.0, %v831_v20  ;;  %v840_v46 = vmul.f32 %v836_v19, %v1876_v7  ;;  %v1016_v47 = vadd.f32 0.5, %v1012_v26  ;;  %v1011_v35 = vmul.f32 0.5, %v1414_v21 }
 0x158   : > { %v1018_v34 = vadd.f32 0.5, %v1014_v27  ;;  %v1013_v39 = vmul.f32 0.5, %v1416_v28  ;;  %v869_v56 = vadd.f32 %v865_v14, %v837_v40  ;;  %v685_v62 = vmul.f32 %v681_v37, %v1874_v6 }
 0x159   : > { %v1020_v50 = vadd.f32 1.0, %v1016_v47  ;;  %v1015_v42 = vadd.f32 0.5, %v1011_v35  ;;  %v839_v58 = vmul.f32 %v835_v33, %v1880_v11  ;;  %v872_v49 = vadd.f32 %v868_v15, %v840_v46 }
 0x15a   : > { %v1022_v41 = vadd.f32 1.0, %v1018_v34  ;;  %v1017_v48 = vadd.f32 0.5, %v1013_v39  ;;  %v680_v63 = vadd.f32 1.0, %v672_v45  ;;  %v674_v3 = vsub.f32 1.0, %v670_v36 }
 0x15b   : > { %v1024_v7 = vmul.f32 %v1020_v50, %v1887_v23  ;;  %v1019_v52 = vadd.f32 1.0, %v1015_v42  ;;  %v871_v23 = vadd.f32 %v867_v25, %v839_v58  ;;  %v676_v5 = vsub.f32 1.0, %v672_v45 }
 0x15c   : > { %v1026_v51 = vmul.f32 %v1022_v41, %v1889_v24  ;;  %v1021_v55 = vadd.f32 1.0, %v1017_v48  ;;  %v682_v9 = vmul.f32 %v678_v54, %v1871_v2  ;;  %v684_v14 = vmul.f32 %v680_v63, %v1878_v10 }
 0x15d   : > { %v1028_v59 = vadd.f32 %v1024_v7, %v870_v44  ;;  %v1023_v11 = vmul.f32 %v1019_v52, %v1891_v29 }
 0x15e   : > { %v1030_v60 = vadd.f32 %v1026_v51, %v872_v49  ;;  %v1025_v24 = vmul.f32 %v1021_v55, %v1893_v30 }
 0x15f   : > { %v1032_v0 = vmul.f32 %v1028_v59, %v675_v38  ;;  %v1027_v4 = vadd.f32 %v1023_v11, %v869_v56 }
 0x160   : > { %v1034_v1 = vmul.f32 %v1030_v60, %v677_v61  ;;  %v1029_v8 = vadd.f32 %v1025_v24, %v871_v23 }
 0x161   : > { %v1036_v12 = vadd.f32 %v1032_v0, %v683_v53  ;;  %v1031_v29 = vmul.f32 %v1027_v4, %v674_v3 }
 0x162   : > { %v1038_v13 = vadd.f32 %v1034_v1, %v685_v62  ;;  %v1033_v15 = vmul.f32 %v1029_v8, %v676_v5 }
 0x163   : > { %v1040_v30 = vadd.f32 %v1036_v12, %v1863_v57  ;;  %v1035_v17 = vadd.f32 %v1031_v29, %v682_v9 }
 0x164   : > { %v1042_v16 = vadd.f32 %v1038_v13, %v1874_v6  ;;  %v1037_v18 = vadd.f32 %v1033_v15, %v684_v14 }
 0x165   : > { %1044 = vst [vmem:[%s510_s17 + $0x8] sm:$0xff] %v1040_v30  ;;  %v1039_v19 = vadd.f32 %v1035_v17, %v1871_v2 }
 0x166   : > { %1046 = vst [vmem:[%s510_s17 + $0x18] sm:$0xff] %v1042_v16  ;;  %v1041_v57 = vadd.f32 %v1037_v18, %v1878_v10 }
 0x167   : > { %1043 = vst [vmem:[%s510_s17] sm:$0xff] %v1039_v19 }
 0x168   : > { %1045 = vst [vmem:[%s510_s17 + $0x10] sm:$0xff] %v1041_v57 }
 0x169   : > { %1458 = shalt.err (!%p1455_p4)
}
 0x16a   : > { %s1459_s18 = scalar_lea.hbm %s1926_s12, 512  ;;  %s1463_s27 = scalar_lea.hbm %s2020_s25, 2048 }
 0x16b   : > { %p1460_p5 = scmp.ne.s32.totalorder %s1926_s12, %s1459_s18  ;;  %p1464_p7 = scmp.lt.u32.totalorder %s1926_s12, %s2020_s25 }
 0x16c   : > { %p1465_p3 = scmp.lt.u32.totalorder %s1463_s27, %s1459_s18  ;;  %p1467_p8 = scmp.lt.u32.totalorder %s1459_s18, %s1926_s12 }
 0x16d   : > { %p1461_p2 = pnand %p1460_p5, %p2021_p12 }
 0x16e   : > { %p1466_p9 = por %p1465_p3, %p1464_p7 }
 0x16f   : > { %p1462_p6 = pneg %p1461_p2 }
 0x170   : > { %p1468_p10 = por %p1467_p8, %p1466_p9 }
 0x172   : > { %p1469_p11 = pnand %p1468_p10, %p1462_p6 }
 0x174   : > { %1472 = shalt.err (!%p1469_p11)
}
 0x175   : > { %s1551_s24 = smov 128   ;;  %s1552_s30 = smov 256  }
 0x176   : > { %s1553_s17 = smov 8  }
 0x177   : > { %1305 = dma.vmem_to_hbm [thread:$0]  (%p2021_p12), %s1920_s29, 512, %s1926_s12, %s1048_s13, %s1551_s24, %s1552_s30, %s1553_s17  }
 0x178 PF: > { %s2022_s26 = sld [smem:[#allocation9_spill]]  ;;  %s2023_s16 = sld [smem:[#allocation16_spill]] }
 0x179   : > { %p1311_p13 = scmp.ge.s32.totalorder %s1543_s20, 2 }
 0x17e   : > { %s1077_s10 = sand.u32 1, %s2022_s26   ;;  %p2024_p0 = scmp.ne.s32.totalorder %s2023_s16, 0 }
 0x17f   : > { %s1078_s3 = scalar_lea.sflag [#allocation5], %s1077_s10 }
 0x180   : > { %p1308_p1 = pnand %p1311_p13, %p2024_p0 }
 0x182   : > { %1510 = dma.done.wait (!%p1308_p1), %s1078_s3, 512  }
 0x183   : > { %1512 = vsyncadd (!%p1308_p1), %s1078_s3, 4294966784  ;;  %s26_s20 = sadd.s32 1, %s1543_s20   ;;  %s2025_s13 = sld [smem:[#allocation10_spill]] }
 0x184   : > { %p23_p4 = scmp.ge.s32.totalorder %s26_s20, 6   ;;  %s2026_s14 = sld [smem:[#allocation11_spill]] }
 0x185   : > { %s2027_s15 = sld [smem:[#allocation17_spill]]  ;;  %s2028_s16 = sld [smem:[#allocation12_spill]] }
 0x186   : > { %s2029_s17 = sld [smem:[#allocation13_spill]]  ;;  %s2030_s18 = sld [smem:[#allocation14_spill]] }
 0x187   : > { %s2031_s19 = sld [smem:[#allocation15_spill]]  ;;  %25 = sbr.rel (!%p23_p4) target bundleno = 11 (0xb), region = 157 }
 0x18e   :  { %1083 = vsyncpa [#allocation4], 1 }
 0x18f   :  { %1085 = vsyncpa [#allocation4 + $0x1], 1 }
 0x190   :  { %1086 = vsyncpa [#allocation5], 1 }
 0x191   :  { %1088 = vsyncpa [#allocation5 + $0x1], 1 }

</bundles_post_ra>
